<compile_context>
chip_gen: v6e
topology: v6e:2x2x1
jax: 0.10.0
libtpu: 0.0.40
codegen_flags: <defaults>
</compile_context>

<pallas_src>
import functools

import jax
import jax.numpy as jnp
from jax import lax
from jax.experimental import pallas as pl
from jax.experimental.pallas import tpu as pltpu


def _round_up(x, m):
    return (x + m - 1) // m * m


def _cdiv(a, b):
    return (a + b - 1) // b


# ---------------------------------------------------------------------------
# Tiling / VMEM heuristics
# ---------------------------------------------------------------------------
def _vmem_capacity_bytes():
    try:
        return int(pltpu.get_tpu_info().vmem_capacity_bytes)
    except Exception:
        return 64 << 20                       # conservative (v7x per-core VMEM)


def _pick_tk(k128, max_tk):
    """Multiple-of-128 tile <= max_tk minimising K padding (largest on ties)."""
    max_tk = max(128, min(max_tk, k128))
    best_pad, best_tk = None, 128
    for t in range(max_tk, 127, -128):
        pad = (-k128) % t
        if best_pad is None or pad < best_pad:
            best_pad, best_tk = pad, t
        if pad == 0:
            break
    return best_tk


def _choose_tiles(M, K, Cout):
    Np = _round_up(Cout, 128)
    m16 = _round_up(max(M, 16), 16)           # 16-row alignment for bf16 blocks
    # >=2 M blocks whenever possible so v7x's two TensorCores both get work;
    # TM grows up to ~512 rows for large M (fewer grid steps / weight reuse).
    nblk = 1 if m16 < 32 else max(2, _cdiv(m16, 512))
    TM = _round_up(_cdiv(m16, nblk), 16)
    Mp = TM * nblk
    k128 = _round_up(K, 128)
    # Tiny-M (latency-bound) layers: collapse the reduction into few big steps.
    max_tk = 4096 if Mp <= 128 else 512
    TK = _pick_tk(k128, max_tk)
    Kp = _round_up(k128, TK)
    return Mp, TM, Kp, TK, Np


def _vmem_estimate(TM, TK, Kp, Np, resident_w, has_bias):
    est = 2 * (2 * TM * TK) * 2               # px, pm: double-buffered bf16
    wrows = Kp if resident_w else TK
    est += 2 * (2 * wrows * Np) * 2           # W and |W|/norm: bf16, 2 buffers
    est += 2 * (2 * TM * Np) * 2              # out, mout: double-buffered bf16
    est += 2 * TM * Np * 4                    # f32 accumulator scratch
    if has_bias:
        est += 2 * Np * 4
    return est


# ---------------------------------------------------------------------------
# Pallas kernel: fused partial-conv layer
#   out  = activ(conv(x*m) [+ b])
#   mout = conv(m, |W| / (sum|W| + 1e-6))      (normalisation folded into W)
# ---------------------------------------------------------------------------
def _soft_conv_kernel(*refs, activ, has_bias, resident_w, TK):
    if has_bias:
        px_ref, pm_ref, w_ref, wm_ref, b_ref, out_ref, mout_ref, accx, accm = refs
    else:
        px_ref, pm_ref, w_ref, wm_ref, out_ref, mout_ref, accx, accm = refs
        b_ref = None

    kk = pl.program_id(1)                     # reduction axis: LAST, 'arbitrary'

    if resident_w:
        # Weights fully VMEM-resident (constant block index -> fetched once);
        # slice out the current K tile.
        off = pl.multiple_of(kk * TK, 128)
        w = w_ref[pl.ds(off, TK), :]
        wm = wm_ref[pl.ds(off, TK), :]
    else:
        w = w_ref[...]
        wm = wm_ref[...]

    x_part = jnp.dot(px_ref[...], w, preferred_element_type=jnp.float32)
    m_part = jnp.dot(pm_ref[...], wm, preferred_element_type=jnp.float32)

    @pl.when(kk == 0)
    def _init():
        accx[...] = x_part
        accm[...] = m_part

    @pl.when(kk > 0)
    def _accumulate():
        accx[...] += x_part
        accm[...] += m_part

    # NOTE: only valid because K is the LAST grid axis (marked 'arbitrary') and
    # the output block index is K-invariant.  Do not reorder the grid.
    @pl.when(kk == pl.num_programs(1) - 1)
    def _finalize():
        o = accx[...]
        if has_bias:
            o = o + b_ref[...]
        if activ == 'relu':
            o = jnp.maximum(o, 0.0)
        elif activ == 'leaky':
            o = jnp.where(o > 0, o, 0.2 * o)
        out_ref[...] = o.astype(out_ref.dtype)
        mout_ref[...] = accm[...].astype(mout_ref.dtype)


def soft_conv_pallas(px, pm, w_mat, wm_mat, bias, activ,
                     out_dtype=jnp.bfloat16, weight_resident=None):
    """px, pm: (M, K) bf16 im2col matrices.
    w_mat:  (K, Cout) f32 conv weights.
    wm_mat: (K, Cout) f32 pre-normalised |W| / (sum|W| + 1e-6)."""
    M, K = px.shape
    Cout = w_mat.shape[1]
    Mp, TM, Kp, TK, Np = _choose_tiles(M, K, Cout)
    has_bias = bias is not None

    # Generation-aware VMEM budget (v7x: 64 MiB -> ~48; v5e/v6e: 128 -> ~96).
    budget = min(int(0.75 * _vmem_capacity_bytes()), 112 << 20)
    if weight_resident is None:
        weight_resident = (_vmem_estimate(TM, TK, Kp, Np, True, has_bias)
                           + (8 << 20)) <= budget
    vmem_limit = min(budget,
                     max(32 << 20,
                         _vmem_estimate(TM, TK, Kp, Np, weight_resident,
                                        has_bias) + (12 << 20)))

    px_p = jnp.pad(px.astype(jnp.bfloat16), ((0, Mp - M), (0, Kp - K)))
    pm_p = jnp.pad(pm.astype(jnp.bfloat16), ((0, Mp - M), (0, Kp - K)))
    w_p = jnp.pad(w_mat, ((0, Kp - K), (0, Np - Cout))).astype(jnp.bfloat16)
    wm_p = jnp.pad(wm_mat, ((0, Kp - K), (0, Np - Cout))).astype(jnp.bfloat16)

    in_specs = [
        pl.BlockSpec((TM, TK), lambda i, k: (i, k)),
        pl.BlockSpec((TM, TK), lambda i, k: (i, k)),
    ]
    if weight_resident:
        in_specs += [pl.BlockSpec((Kp, Np), lambda i, k: (0, 0)),
                     pl.BlockSpec((Kp, Np), lambda i, k: (0, 0))]
    else:
        in_specs += [pl.BlockSpec((TK, Np), lambda i, k: (k, 0)),
                     pl.BlockSpec((TK, Np), lambda i, k: (k, 0))]
    inputs = [px_p, pm_p, w_p, wm_p]
    if has_bias:
        inputs.append(jnp.pad(bias, (0, Np - Cout)).reshape(1, Np)
                      .astype(jnp.float32))
        in_specs.append(pl.BlockSpec((1, Np), lambda i, k: (0, 0)))

    kernel = functools.partial(_soft_conv_kernel, activ=activ,
                               has_bias=has_bias,
                               resident_w=weight_resident, TK=TK)
    out, mout = pl.pallas_call(
        kernel,
        out_shape=(jax.ShapeDtypeStruct((Mp, Np), out_dtype),
                   jax.ShapeDtypeStruct((Mp, Np), out_dtype)),
        grid_spec=pltpu.PrefetchScalarGridSpec(
            num_scalar_prefetch=0,
            grid=(Mp // TM, Kp // TK),
            in_specs=in_specs,
            out_specs=[pl.BlockSpec((TM, Np), lambda i, k: (i, 0)),
                       pl.BlockSpec((TM, Np), lambda i, k: (i, 0))],
            scratch_shapes=[pltpu.VMEM((TM, Np), jnp.float32),
                            pltpu.VMEM((TM, Np), jnp.float32)]),
        compiler_params=pltpu.CompilerParams(
            dimension_semantics=("parallel", "arbitrary"),
            vmem_limit_bytes=int(vmem_limit)),
    )(*inputs)
    return out[:M, :Cout], mout[:M, :Cout]


# ---------------------------------------------------------------------------
# Plain-JAX glue (bf16 end-to-end to minimise wrapper HBM traffic)
# ---------------------------------------------------------------------------
def im2col(x, kh, kw, stride, pad):
    """x: (N, C, H, W) -> (N*Hout*Wout, C*kh*kw), feature order (C, kh, kw)."""
    N, C, H, W = x.shape
    xp = jnp.pad(x, ((0, 0), (0, 0), (pad, pad), (pad, pad)))
    Hout = (H + 2 * pad - kh) // stride + 1
    Wout = (W + 2 * pad - kw) // stride + 1
    cols = []
    for i in range(kh):
        for j in range(kw):
            cols.append(xp[:, :,
                           i:i + stride * (Hout - 1) + 1:stride,
                           j:j + stride * (Wout - 1) + 1:stride])
    cols = jnp.stack(cols, axis=0).reshape(kh, kw, N, C, Hout, Wout)
    cols = cols.transpose(2, 4, 5, 3, 0, 1)   # N, Hout, Wout, C, kh, kw
    return cols.reshape(N * Hout * Wout, C * kh * kw), Hout, Wout


def soft_conv_not_learned_mask(x, mask, w, b, k, stride, pad, activ,
                               out_dtype=jnp.bfloat16, weight_resident=None):
    """One SoftConvNotLearnedMask (+ activation) layer; NCHW in / NCHW out."""
    Cout = w.shape[0]
    N = x.shape[0]
    xm = (x * mask).astype(jnp.bfloat16)      # bf16 BEFORE im2col (half traffic)
    mb = mask.astype(jnp.bfloat16)
    px, Hout, Wout = im2col(xm, k, k, stride, pad)
    pm, _, _ = im2col(mb, k, k, stride, pad)
    w_mat = w.reshape(Cout, -1).T.astype(jnp.float32)          # (Cin*k*k, Cout)
    aw = jnp.abs(w_mat)
    wm_mat = aw / (jnp.sum(aw, axis=0, keepdims=True) + 1e-6)   # pre-normalised
    out, mout = soft_conv_pallas(px, pm, w_mat, wm_mat, b, activ,
                                 out_dtype=out_dtype,
                                 weight_resident=weight_resident)
    out = out.reshape(N, Hout, Wout, Cout).transpose(0, 3, 1, 2)
    mout = mout.reshape(N, Hout, Wout, Cout).transpose(0, 3, 1, 2)
    return out, mout


# ---------------------------------------------------------------------------
# PCBActiv: parameter init + forward (matches the PyTorch module)
# ---------------------------------------------------------------------------
_SAMPLE_CFG = {
    'down-5': (5, 2, 2),
    'down-7': (7, 2, 3),
    'down-3': (3, 2, 1),
    'none-3': (3, 1, 1),
}


def init_pcb_activ(key, in_ch, out_ch, sample='none-3', conv_bias=False):
    k, _, _ = _SAMPLE_CFG.get(sample, _SAMPLE_CFG['none-3'])
    fan_in = in_ch * k * k
    fan_out = out_ch * k * k
    std = (2.0 / (fan_in + fan_out)) ** 0.5            # xavier-normal, gain=1
    w = std * jax.random.normal(key, (out_ch, in_ch, k, k), jnp.float32)
    b = jnp.zeros((out_ch,), jnp.float32) if conv_bias else None
    return {'w': w, 'b': b}


def pcb_activ_forward(params, x, mask, sample='none-3', activ='relu',
                      weight_resident=None):
    k, s, p = _SAMPLE_CFG.get(sample, _SAMPLE_CFG['none-3'])
    return soft_conv_not_learned_mask(x, mask, params['w'], params['b'],
                                      k, s, p, activ,
                                      weight_resident=weight_resident)


# ---------------------------------------------------------------------------
# Pure-JAX reference (for correctness verification only)
# ---------------------------------------------------------------------------
def _reference_pcb_activ(params, x, mask, sample='none-3', activ='relu'):
    k, s, p = _SAMPLE_CFG.get(sample, _SAMPLE_CFG['none-3'])
    w, b = params['w'], params['b']
    dn = lax.conv_dimension_numbers(x.shape, w.shape, ('NCHW', 'OIHW', 'NCHW'))
    out = lax.conv_general_dilated(x * mask, w, (s, s), [(p, p), (p, p)],
                                   dimension_numbers=dn)
    if b is not None:
        out = out + b.reshape(1, -1, 1, 1)
    aw = jnp.abs(w)
    norm = jnp.sum(aw.reshape(w.shape[0], -1), axis=1).reshape(1, -1, 1, 1)
    new_mask = lax.conv_general_dilated(mask, aw, (s, s), [(p, p), (p, p)],
                                        dimension_numbers=dn) / (norm + 1e-6)
    if activ == 'relu':
        out = jnp.maximum(out, 0.0)
    elif activ == 'leaky':
        out = jnp.where(out > 0, out, 0.2 * out)
    return out, new_mask


if __name__ == "__main__":
    key = jax.random.PRNGKey(0)
    k_x, k_m, k_x2, k_m2, k_p = jax.random.split(key, 5)

    N, H, W = 2, 16, 16
    x_small = jax.random.normal(k_x, (N, 4, H, W), jnp.float32)
    m_small = (jax.random.uniform(k_m, (N, 4, H, W)) > 0.3).astype(jnp.float32)
    x_wide = jax.random.normal(k_x2, (N, 256, H, W), jnp.float32)
    m_wide = (jax.random.uniform(k_m2, (N, 256, H, W)) > 0.3).astype(jnp.float32)

    # (x, mask, out_ch, sample, activ, conv_bias, weight_resident_override)
    # Covers: relu/leaky/none, bias/no-bias, stride-1/stride-2, single- and
    # multi-K-step, resident-weight and K-tiled-weight kernel paths.
    configs = [
        (x_small, m_small, 64, 'down-7', 'relu',  False, None),
        (x_small, m_small, 48, 'none-3', 'leaky', True,  None),
        (x_wide,  m_wide,  64, 'none-3', None,    False, None),    # resident, multi-K
        (x_wide,  m_wide,  64, 'none-3', 'relu',  False, False),   # tiled-weight path
    ]

    keys = jax.random.split(k_p, len(configs))
    for key_i, (x, mask, out_ch, sample, activ, conv_bias, res) in zip(keys, configs):
        params = init_pcb_activ(key_i, x.shape[1], out_ch, sample, conv_bias)
        h, h_mask = pcb_activ_forward(params, x, mask, sample=sample,
                                      activ=activ, weight_resident=res)
        h = jax.block_until_ready(h)
        h_mask = jax.block_until_ready(h_mask)

        h_ref, m_ref = _reference_pcb_activ(params, x, mask,
                                            sample=sample, activ=activ)
        assert h.shape == h_ref.shape and h_mask.shape == m_ref.shape
        assert bool(jnp.all(jnp.isfinite(h.astype(jnp.float32))))
        assert bool(jnp.all(jnp.isfinite(h_mask.astype(jnp.float32))))
        out_err = float(jnp.max(jnp.abs(h - h_ref)) /
                        (jnp.max(jnp.abs(h_ref)) + 1e-6))
        mask_err = float(jnp.max(jnp.abs(h_mask - m_ref)))
        assert out_err < 5e-2, f"{sample}/{activ}: out_err={out_err}"
        assert mask_err < 3e-2, f"{sample}/{activ}: mask_err={mask_err}"

    print("KERNEL_OK")
</pallas_src>

<mosaic_0001>
module attributes {stable_mosaic.version = 11 : i64} {
  func.func @_soft_conv_kernel(%arg0: i32, %arg1: i32, %arg2: memref<64x256xbf16, #tpu.memory_space<vmem>>, %arg3: memref<64x256xbf16, #tpu.memory_space<vmem>>, %arg4: memref<256x128xbf16, #tpu.memory_space<vmem>>, %arg5: memref<256x128xbf16, #tpu.memory_space<vmem>>, %arg6: memref<64x128xbf16, #tpu.memory_space<vmem>>, %arg7: memref<64x128xbf16, #tpu.memory_space<vmem>>, %arg8: memref<64x128xf32, #tpu.memory_space<vmem>>, %arg9: memref<64x128xf32, #tpu.memory_space<vmem>>) attributes {dimension_semantics = [#tpu.dimension_semantics<parallel>, #tpu.dimension_semantics<arbitrary>], iteration_bounds = array<i64: 2, 1>, scalar_prefetch = 0 : i64, scratch_operands = 2 : i64, tpu.core_type = #tpu.core_type<tc>, window_params = [{transform_indices = @transform_0, window_bounds = array<i64: 64, 256>}, {transform_indices = @transform_1, window_bounds = array<i64: 64, 256>}, {pipeline_mode = #tpu.pipeline_mode<synchronous>, transform_indices = @transform_2, window_bounds = array<i64: 256, 128>}, {pipeline_mode = #tpu.pipeline_mode<synchronous>, transform_indices = @transform_3, window_bounds = array<i64: 256, 128>}, {transform_indices = @transform_4, window_bounds = array<i64: 64, 128>}, {transform_indices = @transform_5, window_bounds = array<i64: 64, 128>}]} {
    %c256_i32 = arith.constant 256 : i32
    %0 = arith.muli %arg1, %c256_i32 : i32
    %1 = tpu.assume_multiple %0, 128 : i32
    %2 = arith.index_cast %1 : i32 to index
    %c0 = arith.constant 0 : index
    %3 = vector.load %arg4[%2, %c0] : memref<256x128xbf16, #tpu.memory_space<vmem>>, vector<256x128xbf16>
    %4 = arith.index_cast %1 : i32 to index
    %c0_0 = arith.constant 0 : index
    %5 = vector.load %arg5[%4, %c0_0] : memref<256x128xbf16, #tpu.memory_space<vmem>>, vector<256x128xbf16>
    %c0_1 = arith.constant 0 : index
    %c0_2 = arith.constant 0 : index
    %6 = vector.load %arg2[%c0_1, %c0_2] : memref<64x256xbf16, #tpu.memory_space<vmem>>, vector<64x256xbf16>
    %cst = arith.constant dense<0.000000e+00> : vector<64x128xf32>
    %7 = tpu.matmul %6, %3, %cst {dimension_numbers = #tpu.dot_dimension_numbers<[1], [0], [0], [1], [0, 0, 1, 1], [], []>} : vector<64x256xbf16>, vector<256x128xbf16>, vector<64x128xf32> -> vector<64x128xf32>
    %c0_3 = arith.constant 0 : index
    %c0_4 = arith.constant 0 : index
    %8 = vector.load %arg3[%c0_3, %c0_4] : memref<64x256xbf16, #tpu.memory_space<vmem>>, vector<64x256xbf16>
    %cst_5 = arith.constant dense<0.000000e+00> : vector<64x128xf32>
    %9 = tpu.matmul %8, %5, %cst_5 {dimension_numbers = #tpu.dot_dimension_numbers<[1], [0], [0], [1], [0, 0, 1, 1], [], []>} : vector<64x256xbf16>, vector<256x128xbf16>, vector<64x128xf32> -> vector<64x128xf32>
    %c0_i32 = arith.constant 0 : i32
    %10 = arith.cmpi eq, %arg1, %c0_i32 : i32
    %11 = arith.extui %10 : i1 to i32
    %c0_i32_6 = arith.constant 0 : i32
    %12 = arith.cmpi ne, %11, %c0_i32_6 : i32
    scf.if %12 {
      %c0_11 = arith.constant 0 : index
      %c0_12 = arith.constant 0 : index
      %19 = vector.load %arg8[%c0_11, %c0_12] : memref<64x128xf32, #tpu.memory_space<vmem>>, vector<64x128xf32>
      tpu.vector_store %arg8[%c0_11, %c0_12], %7 {strides = array<i32>} : memref<64x128xf32, #tpu.memory_space<vmem>>, vector<64x128xf32>,
      %c0_13 = arith.constant 0 : index
      %c0_14 = arith.constant 0 : index
      %20 = vector.load %arg9[%c0_13, %c0_14] : memref<64x128xf32, #tpu.memory_space<vmem>>, vector<64x128xf32>
      tpu.vector_store %arg9[%c0_13, %c0_14], %9 {strides = array<i32>} : memref<64x128xf32, #tpu.memory_space<vmem>>, vector<64x128xf32>,
    } else {
    }
    %c0_i32_7 = arith.constant 0 : i32
    %13 = arith.cmpi sgt, %arg1, %c0_i32_7 : i32
    %14 = arith.extui %13 : i1 to i32
    %c0_i32_8 = arith.constant 0 : i32
    %15 = arith.cmpi ne, %14, %c0_i32_8 : i32
    scf.if %15 {
      %c0_11 = arith.constant 0 : index
      %c0_12 = arith.constant 0 : index
      %19 = vector.load %arg8[%c0_11, %c0_12] : memref<64x128xf32, #tpu.memory_space<vmem>>, vector<64x128xf32>
      %20 = arith.addf %19, %7 : vector<64x128xf32>
      %c0_13 = arith.constant 0 : index
      %c0_14 = arith.constant 0 : index
      %21 = vector.load %arg8[%c0_13, %c0_14] : memref<64x128xf32, #tpu.memory_space<vmem>>, vector<64x128xf32>
      tpu.vector_store %arg8[%c0_13, %c0_14], %20 {strides = array<i32>} : memref<64x128xf32, #tpu.memory_space<vmem>>, vector<64x128xf32>,
      %c0_15 = arith.constant 0 : index
      %c0_16 = arith.constant 0 : index
      %22 = vector.load %arg9[%c0_15, %c0_16] : memref<64x128xf32, #tpu.memory_space<vmem>>, vector<64x128xf32>
      %23 = arith.addf %22, %9 : vector<64x128xf32>
      %c0_17 = arith.constant 0 : index
      %c0_18 = arith.constant 0 : index
      %24 = vector.load %arg9[%c0_17, %c0_18] : memref<64x128xf32, #tpu.memory_space<vmem>>, vector<64x128xf32>
      tpu.vector_store %arg9[%c0_17, %c0_18], %23 {strides = array<i32>} : memref<64x128xf32, #tpu.memory_space<vmem>>, vector<64x128xf32>,
    } else {
    }
    %c0_i32_9 = arith.constant 0 : i32
    %16 = arith.cmpi eq, %arg1, %c0_i32_9 : i32
    %17 = arith.extui %16 : i1 to i32
    %c0_i32_10 = arith.constant 0 : i32
    %18 = arith.cmpi ne, %17, %c0_i32_10 : i32
    scf.if %18 {
      %c0_11 = arith.constant 0 : index
      %c0_12 = arith.constant 0 : index
      %19 = vector.load %arg8[%c0_11, %c0_12] : memref<64x128xf32, #tpu.memory_space<vmem>>, vector<64x128xf32>
      %cst_13 = arith.constant 0.000000e+00 : f32
      %20 = vector.broadcast %cst_13 : f32 to vector<64x128xf32>
      %21 = arith.maximumf %19, %20 : vector<64x128xf32>
      %22 = arith.truncf %21 : vector<64x128xf32> to vector<64x128xbf16>
      %c0_14 = arith.constant 0 : index
      %c0_15 = arith.constant 0 : index
      %23 = vector.load %arg6[%c0_14, %c0_15] : memref<64x128xbf16, #tpu.memory_space<vmem>>, vector<64x128xbf16>
      tpu.vector_store %arg6[%c0_14, %c0_15], %22 {strides = array<i32>} : memref<64x128xbf16, #tpu.memory_space<vmem>>, vector<64x128xbf16>,
      %c0_16 = arith.constant 0 : index
      %c0_17 = arith.constant 0 : index
      %24 = vector.load %arg9[%c0_16, %c0_17] : memref<64x128xf32, #tpu.memory_space<vmem>>, vector<64x128xf32>
      %25 = arith.truncf %24 : vector<64x128xf32> to vector<64x128xbf16>
      %c0_18 = arith.constant 0 : index
      %c0_19 = arith.constant 0 : index
      %26 = vector.load %arg7[%c0_18, %c0_19] : memref<64x128xbf16, #tpu.memory_space<vmem>>, vector<64x128xbf16>
      tpu.vector_store %arg7[%c0_18, %c0_19], %25 {strides = array<i32>} : memref<64x128xbf16, #tpu.memory_space<vmem>>, vector<64x128xbf16>,
    } else {
    }
    return
  }
  func.func @transform_0(%arg0: i32, %arg1: i32) -> (i32, i32) {
    %c0_i32 = arith.constant 0 : i32
    return %arg0, %arg1 : i32, i32
  }
  func.func @transform_1(%arg0: i32, %arg1: i32) -> (i32, i32) {
    %c0_i32 = arith.constant 0 : i32
    return %arg0, %arg1 : i32, i32
  }
  func.func @transform_2(%arg0: i32, %arg1: i32) -> (i32, i32) {
    %c0_i32 = arith.constant 0 : i32
    %c0_i32_0 = arith.constant 0 : i32
    %c0_i32_1 = arith.constant 0 : i32
    return %c0_i32, %c0_i32_0 : i32, i32
  }
  func.func @transform_3(%arg0: i32, %arg1: i32) -> (i32, i32) {
    %c0_i32 = arith.constant 0 : i32
    %c0_i32_0 = arith.constant 0 : i32
    %c0_i32_1 = arith.constant 0 : i32
    return %c0_i32, %c0_i32_0 : i32, i32
  }
  func.func @transform_4(%arg0: i32, %arg1: i32) -> (i32, i32) {
    %c0_i32 = arith.constant 0 : i32
    %c0_i32_0 = arith.constant 0 : i32
    return %arg0, %c0_i32 : i32, i32
  }
  func.func @transform_5(%arg0: i32, %arg1: i32) -> (i32, i32) {
    %c0_i32 = arith.constant 0 : i32
    %c0_i32_0 = arith.constant 0 : i32
    return %arg0, %c0_i32 : i32, i32
  }
}

</mosaic_0001>

<bundles_post_ra>
// kernel: tpu_custom_call.1
= control target key start
LH: loop header
LB: loop body
LE: loop exit
PB: predicated region body
PF: predicated region fallthrough
CT: control target
= control target key end

     0   :  { %s2172_s0 = inlined_call_operand.hbm [shape: bf16[128,256], index: 0, kind: input, shape index: {}]   ;;  %s2173_s1 = inlined_call_operand.hbm [shape: bf16[128,256], index: 1, kind: input, shape index: {}]   ;;  %s2174_s2 = inlined_call_operand.hbm [shape: bf16[256,128], index: 2, kind: input, shape index: {}]   ;;  %s2175_s3 = inlined_call_operand.hbm [shape: bf16[256,128], index: 3, kind: input, shape index: {}]   ;;  %s2176_s4 = inlined_call_operand.hbm [shape: bf16[128,128], index: 4, kind: output, shape index: {0}]   ;;  %s2177_s5 = inlined_call_operand.hbm [shape: bf16[128,128], index: 5, kind: output, shape index: {1}]  }
   0x1   :  { %2181 = sst [smem:[#allocation24_spill]] %s2172_s0 }
   0x2   :  { %2182 = sst [smem:[#allocation25_spill]] %s2174_s2 }
   0x3   :  { %2183 = sst [smem:[#allocation26_spill]] %s2175_s3 }
   0x4   :  { %11 = vsyncpa [#allocation5], 0 }
   0x5   :  { %13 = vsyncpa [#allocation5 + $0x1], 0 }
   0x6   :  { %14 = vsyncpa [#allocation8], 0 }
   0x7   :  { %16 = vsyncpa [#allocation8 + $0x1], 0 }
   0x8   :  { %17 = vsyncpa [#allocation11], 0 }
   0x9   :  { %18 = vsyncpa [#allocation6], 0 }
   0xa   :  { %20 = vsyncpa [#allocation6 + $0x1], 0 }
   0xb   :  { %21 = vsyncpa [#allocation14], 0 }
   0xc   :  { %23 = vsyncpa [#allocation14 + $0x1], 0  ;;  %s1890_s18 = smov 0   ;;  %s1892_s19 = smov 0  }
   0xd   :  { %s1894_s20 = smov 0   ;;  %s1896_s21 = smov 0  }
   0xe   :  { %s1898_s22 = smov 0   ;;  %s1900_s23 = smov 0  }
   0xf LB: > { %2184 = sst [smem:[#allocation21_spill]] %s1834_s20  ;;  %s1921_s24 = sadd.s32 4294967295, %s1846_s23   ;;  %s1846_s23 = sphi %s1900_s23, %s29_s23   ;;  %s1842_s22 = sphi %s1898_s22, %s2209_s22   ;;  %s1838_s21 = sphi %s1896_s21, %s2208_s21   ;;  %s1834_s20 = sphi %s1894_s20, %s2204_s20   ;;  %s1830_s19 = sphi %s1892_s19, %s2207_s19   ;;  %s1826_s18 = sphi %s1890_s18, %s2206_s18  }
  0x10   : > { %s1221_s25 = sadd.s32 4294967294, %s1846_s23   ;;  %p63_p0 = scmp.ne.s32.totalorder %s1830_s19, %s1826_s18 }
  0x11   : > { %p2178_p1 = scmp.eq.s32.totalorder %s1921_s24, 0  ;;  %p163_p3 = scmp.eq.s32.totalorder %s1221_s25, 1 }
  0x12   : > { %p1222_p5 = scmp.ge.s32.totalorder %s1846_s23, 1  ;;  %p196_p7 = scmp.lt.s32.totalorder %s1846_s23, 3 }
  0x13   : > { %p1930_p4 = por %p2178_p1, %p63_p0  ;;  %p1935_p6 = por %p163_p3, %p63_p0 }
  0x14   : > { %p1940_p8 = pnand %p1222_p5, %p196_p7  ;;  %s1848_s29 = smov [#allocation9]  }
  0x15   : > { %s2186_s27 = scalar_select %p1935_p6, 1, 0 }
  0x16   : > { %s208_s30 = sshll.u32 %s1848_s29, 4  ;;  %p1477_p9 = pneg %p1940_p8  ;;  %s209_s30 = int_to_ptr.vmem [resolvable:$true] %s208_s30 }
  0x17   : > { %s1849_s7 = smov [#allocation10]   ;;  %s1627_s9 = scalar_lea.vmem %s209_s30, 2048 }
  0x18   : > { %p1949_p11 = pnand %p1477_p9, %p2178_p1  ;;  %s221_s8 = sshll.u32 %s1849_s7, 4  ;;  %s222_s8 = int_to_ptr.vmem [resolvable:$true] %s221_s8 }
  0x19   : > { %p1628_p13 = scmp.ne.s32.totalorder %s209_s30, %s1627_s9  ;;  %p1635_p5 = scmp.lt.s32.totalorder %s209_s30, %s209_s30 }
  0x1a   : > { %p1618_p12 = pneg %p1949_p11  ;;  %p1636_p7 = scmp.lt.s32.totalorder %s1627_s9, %s1627_s9 }
  0x1c   : > { %p1630_p0 = pnand %p1628_p13, %p1618_p12  ;;  %p1637_p10 = por %p1636_p7, %p1635_p5 }
  0x1e   : > { %p1631_p3 = pneg %p1630_p0 }
  0x20   : > { %p1638_p9 = pnand %p1637_p10, %p1631_p3 }
  0x22   : > { %1641 = shalt.err (!%p1638_p9)
}
  0x23   : > { %s1850_s10 = smov 64   ;;  %s1851_s11 = smov 4  }
  0x24   : > { %s2189_s2 = sld [smem:[#allocation25_spill]]  ;;  %s1653_s14 = scalar_lea.vmem %s222_s8, 2048 }
  0x25   : > { %p1654_p1 = scmp.ne.s32.totalorder %s222_s8, %s1653_s14  ;;  %p1661_p2 = scmp.lt.s32.totalorder %s222_s8, %s222_s8 }
  0x26   : > { %p1662_p6 = scmp.lt.s32.totalorder %s1653_s14, %s1653_s14 }
  0x27   : > { %p1656_p13 = pnand %p1654_p1, %p1618_p12 }
  0x28   : > { %p1663_p5 = por %p1662_p6, %p1661_p2 }
  0x29   : > { %p1657_p0 = pneg %p1656_p13 }
  0x2a   : > { %1480 = dma.hbm_to_vmem [thread:$0]  (!%p1949_p11), %s2189_s2, 2048, %s209_s30, [#allocation8], %s1850_s10, %s1850_s10, %s1851_s11  }
  0x2b   : > { %p1664_p10 = pnand %p1663_p5, %p1657_p0 }
  0x2d   : > { %1667 = shalt.err (!%p1664_p10)
}
  0x2e   : > { %s2190_s3 = sld [smem:[#allocation26_spill]]  ;;  %s41_s17 = sadd.s32 1, %s1842_s22 }
  0x2f   : > { %s50_s25 = sadd.s32 1, %s1834_s20  ;;  %p43_p1 = scmp.ge.s32.totalorder %s41_s17, 2 }
  0x30   : > { %p57_p2 = scmp.ne.s32.totalorder %s1834_s20, %s1830_s19  ;;  %p58_p6 = scmp.eq.s32.totalorder %s1846_s23, 0 }
  0x31   : > { %p1500_p12 = scmp.lt.s32.totalorder %s1846_s23, 2  ;;  %s2211_s17 = smov (%p43_p1, %s41_s17), 0 }
  0x32   : > { %2191 = sst [smem:[#allocation22_spill]] %s2211_s17  ;;  %p59_p3 = por %p58_p6, %p57_p2 }
  0x33   : > { %p2192_p7 = scmp.eq.s32.totalorder %s1921_s24, 1  ;;  %s45_s30 = ssub.s32 %s1842_s22, %s2211_s17 }
  0x34   : > { %1483 = dma.hbm_to_vmem [thread:$0]  (!%p1949_p11), %s2190_s3, 2048, %s222_s8, [#allocation11], %s1850_s10, %s1850_s10, %s1851_s11  }
  0x35   : > { %p1981_p9 = por %p2192_p7, %p57_p2  ;;  %s235_s6 = sand.u32 1, %s1834_s20  }
  0x36   : > { %p48_p11 = scmp.eq.s32.totalorder %s45_s30, 0  ;;  %s1988_s7 = sshll.u32 %s235_s6, 6 }
  0x37   : > { %s1314_s8 = sshll.u32 %s1842_s22, 10  ;;  %s2195_s0 = sld [smem:[#allocation24_spill]] }
  0x38   : > { %s1992_s9 = scalar_select %p48_p11, %s1834_s20, %s50_s25  }
  0x39   : > { %s239_s13 = scalar_lea.vmem [#allocation4], %s1988_s7  ;;  %p2002_p13 = pnand %p1500_p12, %p59_p3 }
  0x3a   : > { %2194 = sst [smem:[#allocation23_spill]] %s1992_s9  ;;  %s249_s14 = sshll.u32 %s239_s13, 4  ;;  %s250_s14 = int_to_ptr.vmem [resolvable:$true] %s249_s14 }
  0x3b   : > { %s236_s16 = scalar_lea.sflag [#allocation5], %s235_s6  ;;  %p1670_p0 = pneg %p2002_p13 }
  0x3c   : > { %s1681_s25 = scalar_lea.vmem %s250_s14, 1024  ;;  %s1852_s30 = smov [#allocation4]  }
  0x3d   : > { %s248_s12 = scalar_lea.hbm %s2195_s0, %s1314_s8  ;;  %p1682_p5 = scmp.ne.s32.totalorder %s250_s14, %s1681_s25 }
  0x3e   : > { %s1686_s10 = sshll.u32 %s1852_s30, 4  ;;  %s1687_s10 = int_to_ptr.vmem [resolvable:$false] %s1686_s10 }
  0x3f   : > { %p1684_p10 = pnand %p1682_p5, %p1670_p0  ;;  %s1688_s11 = scalar_lea.vmem %s1687_s10, 2048 }
  0x40   : > { %p1689_p2 = scmp.lt.s32.totalorder %s250_s14, %s1687_s10  ;;  %p1690_p6 = scmp.lt.s32.totalorder %s1688_s11, %s1681_s25 }
  0x41   : > { %p1685_p1 = pneg %p1684_p10 }
  0x42   : > { %p1691_p12 = por %p1690_p6, %p1689_p2 }
  0x44   : > { %p1692_p3 = pnand %p1691_p12, %p1685_p1 }
  0x46   : > { %1695 = shalt.err (!%p1692_p3)
}
  0x47   : > { %s1853_s13 = smov 128   ;;  %s1854_s6 = smov 8  }
  0x48   : > { %1487 = dma.hbm_to_vmem [thread:$0]  (!%p2002_p13), %s248_s12, 1024, %s250_s14, %s236_s16, %s1853_s13, %s1853_s13, %s1854_s6  }
  0x49   : > { %s272_s30 = scalar_lea.hbm %s2173_s1, %s1314_s8  ;;  %s263_s3 = scalar_lea.vmem [#allocation7], %s1988_s7 }
  0x4a   : > { %s273_s10 = sshll.u32 %s263_s3, 4  ;;  %s259_s25 = sand.u32 1, %s1846_s23   ;;  %s274_s10 = int_to_ptr.vmem [resolvable:$true] %s273_s10 }
  0x4b   : > { %s260_s11 = scalar_lea.sflag [#allocation8], %s259_s25  ;;  %s1709_s17 = scalar_lea.vmem %s274_s10, 1024 }
  0x4c   : > { %p1710_p7 = scmp.ne.s32.totalorder %s274_s10, %s1709_s17  ;;  %s1855_s9 = smov [#allocation7]  }
  0x4d   : > { %s1714_s20 = sshll.u32 %s1855_s9, 4  ;;  %s1715_s20 = int_to_ptr.vmem [resolvable:$false] %s1714_s20 }
  0x4e   : > { %p1712_p11 = pnand %p1710_p7, %p1670_p0  ;;  %s1716_s12 = scalar_lea.vmem %s1715_s20, 2048 }
  0x4f   : > { %p1717_p10 = scmp.lt.s32.totalorder %s274_s10, %s1715_s20  ;;  %p1718_p1 = scmp.lt.s32.totalorder %s1716_s12, %s1709_s17 }
  0x50   : > { %p1713_p5 = pneg %p1712_p11 }
  0x51   : > { %p1719_p2 = por %p1718_p1, %p1717_p10 }
  0x53   : > { %p1720_p6 = pnand %p1719_p2, %p1713_p5 }
  0x55   : > { %1723 = shalt.err (!%p1720_p6)
}
  0x56   : > { %1490 = dma.hbm_to_vmem [thread:$0]  (!%p2002_p13), %s272_s30, 1024, %s274_s10, %s260_s11, %s1853_s13, %s1853_s13, %s1854_s6  }
  0x57   : > { %285 = sbr.rel (%p1940_p8) target bundleno = 401 (0x191), region = 36  ;;  %s2028_s0 = sand.u32 (!%p1940_p8), 1, %s1830_s19  }
  0x58   : > { %s1235_s2 = sshll.u32 (!%p1940_p8), %s2028_s0, 6  ;;  %s288_s3 = scalar_lea.sflag (!%p1940_p8), [#allocation5], %s2028_s0 }
  0x59   : > { %s2032_s7 = scalar_lea.vmem (!%p1940_p8), [#allocation4], %s1235_s2 }
  0x5c   : > { %1801 = dma.done.wait (%p1930_p4), %s288_s3, 1024  }
  0x5d   : > { %1803 = vsyncadd (%p1930_p4), %s288_s3, 4294966272  ;;  %s296_s20 = sand.u32 1, %s1921_s24   ;;  %s2039_s17 = scalar_lea.vmem [#allocation7], %s1235_s2 }
  0x5e   : > { %s297_s28 = scalar_lea.sflag [#allocation8], %s296_s20 }
  0x5f   : > { %1805 = dma.done.wait (%p1930_p4), %s297_s28, 1024  }
  0x60   : > { %1807 = vsyncadd (%p1930_p4), %s297_s28, 4294966272  ;;  %p2197_p8 = scmp.eq.s32.totalorder %s1921_s24, 0 }
  0x62   : > { %1809 = dma.done.wait (%p2197_p8), [#allocation8], 2048   ;;  %p2198_p13 = pmov %p2197_p8 }
  0x63   : > { %p2199_p0 = pmov %p2197_p8 }
  0x64   : > { %1811 = vsyncadd (%p2198_p13), [#allocation8], 4294965248 }
  0x65   : > { %1813 = dma.done.wait (%p2199_p0), [#allocation11], 2048   ;;  %p2200_p12 = pmov %p2199_p0 }
  0x66   : > { %v1560_v0 = vld [vmem:[#allocation9 + $0x78] sm:$0xff]   ;;  %v1564_v4 = vld [vmem:[#allocation9 + $0x70] sm:$0xff]   ;;  %v1568_v8 = vld [vmem:[#allocation9 + $0x68] sm:$0xff]   ;;  %s1239_s24 = sshll.u32 %s2028_s0, 5  ;;  %s1333_s15 = sshll.u32 %s1838_s21, 9 }
  0x67   : > { %1815 = vsyncadd (%p2200_p12), [#allocation11], 4294965248  ;;  %v1561_v1 = vld [vmem:[#allocation10 + $0x78] sm:$0xff]   ;;  %1381 = vmatprep.subr.bf16.mxu0 %v1560_v0  ;;  %v1565_v5 = vld [vmem:[#allocation10 + $0x70] sm:$0xff]   ;;  %s2070_s26 = scalar_lea.vmem [#allocation13], %s1239_s24  ;;  %s2073_s8 = scalar_lea.vmem [#allocation12], %s1239_s24 }
  0x68   : > { %v1562_v2 = vld [vmem:[#allocation9 + $0x38] sm:$0xff]   ;;  %1421 = vmatprep.subr.bf16.mxu1 %v1561_v1  ;;  %v1566_v6 = vld [vmem:[#allocation9 + $0x30] sm:$0xff]   ;;  %v1569_v9 = vld [vmem:[#allocation10 + $0x68] sm:$0xff]   ;;  %s1039_s9 = sshll.u32 %s2073_s8, 4  ;;  %s1055_s14 = sshll.u32 %s2070_s26, 4  ;;  %s2083_s9 = int_to_ptr.vmem [resolvable:$true] %s1039_s9  ;;  %s2085_s14 = int_to_ptr.vmem [resolvable:$true] %s1055_s14 }
  0x69   : > { %v1563_v3 = vld [vmem:[#allocation10 + $0x38] sm:$0xff]   ;;  %1382 = vmatpush3.bf16.msra.mxu0 %v1562_v2  ;;  %v1567_v7 = vld [vmem:[#allocation10 + $0x30] sm:$0xff]   ;;  %v1570_v10 = vld [vmem:[#allocation9 + $0x28] sm:$0xff]   ;;  %s2090_s6 = scalar_lea.hbm %s2177_s5, %s1333_s15  ;;  %s2095_s10 = scalar_lea.hbm %s2176_s4, %s1333_s15 }
  0x6a   : > { %1422 = vmatpush3.bf16.msra.mxu1 %v1563_v3  ;;  %1383 = vmatprep.subr.bf16.mxu0 %v1564_v4  ;;  %v1571_v11 = vld [vmem:[#allocation10 + $0x28] sm:$0xff]   ;;  %v1572_v12 = vld [vmem:[#allocation9 + $0x60] sm:$0xff]   ;;  %v1576_v16 = vld [vmem:[#allocation9 + $0x58] sm:$0xff]   ;;  %s1026_s25 = scalar_lea.sflag [#allocation14], %s2028_s0  ;;  %s1724_s11 = scalar_lea.vmem %s2085_s14, 512 }
  0x6b   : > { %1423 = vmatprep.subr.bf16.mxu1 %v1565_v5  ;;  %v1573_v13 = vld [vmem:[#allocation10 + $0x60] sm:$0xff]   ;;  %v1577_v17 = vld [vmem:[#allocation10 + $0x58] sm:$0xff]   ;;  %v1580_v20 = vld [vmem:[#allocation9 + $0x50] sm:$0xff]   ;;  %p1725_p4 = scmp.ne.s32.totalorder %s2085_s14, %s1724_s11  ;;  %s1856_s12 = smov [#allocation13]  }
  0x6c   : > { %v1574_v14 = vld [vmem:[#allocation9 + $0x20] sm:$0xff]   ;;  %v1578_v18 = vld [vmem:[#allocation9 + $0x18] sm:$0xff]   ;;  %v1581_v21 = vld [vmem:[#allocation10 + $0x50] sm:$0xff]   ;;  %s1728_s2 = sshll.u32 %s1856_s12, 4  ;;  %s1729_s2 = int_to_ptr.vmem [resolvable:$false] %s1728_s2 }
  0x6d   : > { %1384 = vmatpush3.bf16.msra.mxu0 %v1566_v6  ;;  %v1575_v15 = vld [vmem:[#allocation10 + $0x20] sm:$0xff]   ;;  %v1579_v19 = vld [vmem:[#allocation10 + $0x18] sm:$0xff]   ;;  %v1582_v22 = vld [vmem:[#allocation9 + $0x10] sm:$0xff]   ;;  %p1726_p3 = pnand %p1725_p4, %p1981_p9  ;;  %s1730_s3 = scalar_lea.vmem %s1729_s2, 1024 }
  0x6e   : > { %1424 = vmatpush3.bf16.msra.mxu1 %v1567_v7  ;;  %1385 = vmatprep.subr.bf16.mxu0 %v1568_v8  ;;  %v1583_v23 = vld [vmem:[#allocation10 + $0x10] sm:$0xff]   ;;  %v1584_v24 = vld [vmem:[#allocation9 + $0x48] sm:$0xff]   ;;  %v1588_v28 = vld [vmem:[#allocation9 + $0x40] sm:$0xff]   ;;  %p1731_p11 = scmp.lt.s32.totalorder %s2085_s14, %s1729_s2  ;;  %p1732_p5 = scmp.lt.s32.totalorder %s1730_s3, %s1724_s11 }
  0x6f   : > { %1425 = vmatprep.subr.bf16.mxu1 %v1569_v9  ;;  %v1585_v25 = vld [vmem:[#allocation10 + $0x48] sm:$0xff]   ;;  %v1589_v29 = vld [vmem:[#allocation10 + $0x40] sm:$0xff]   ;;  %v1598_v36 = vld [vmem:[%s2032_s7 + $0x14] ss:$8 sps:$4 sm:$0xff]   ;;  %p1727_p7 = pneg %p1726_p3 }
  0x70   : > { %v1586_v26 = vld [vmem:[#allocation9 + $0x8] sm:$0xff]   ;;  %v1590_v30 = vld [vmem:[#allocation9] sm:$0xff]   ;;  %v1600_v37 = vld [vmem:[%s2039_s17 + $0x14] ss:$8 sps:$4 sm:$0xff]   ;;  %p1733_p10 = por %p1732_p5, %p1731_p11 }
  0x71   : > { %1386 = vmatpush3.bf16.msra.mxu0 %v1570_v10  ;;  %v1587_v27 = vld [vmem:[#allocation10 + $0x8] sm:$0xff]   ;;  %v1591_v31 = vld [vmem:[#allocation10] sm:$0xff]   ;;  %v1602_v38 = vld [vmem:[%s2032_s7 + $0x10] ss:$8 sps:$4 sm:$0xff]  }
  0x72   : > { %1426 = vmatpush3.bf16.msra.mxu1 %v1571_v11  ;;  %1387 = vmatprep.subr.bf16.mxu0 %v1572_v12  ;;  %v1592_v32 = vld [vmem:[%s2032_s7] ss:$8 sps:$4 sm:$0xff]   ;;  %v1594_v33 = vld [vmem:[%s2032_s7 + $0x4] ss:$8 sps:$4 sm:$0xff]   ;;  %v1603_v39 = vld [vmem:[%s2039_s17 + $0x10] ss:$8 sps:$4 sm:$0xff]   ;;  %p1734_p1 = pnand %p1733_p10, %p1727_p7 }
  0x73   : > { %1427 = vmatprep.subr.bf16.mxu1 %v1573_v13  ;;  %v1595_v34 = vld [vmem:[%s2039_s17] ss:$8 sps:$4 sm:$0xff]   ;;  %v1597_v35 = vld [vmem:[%s2039_s17 + $0x4] ss:$8 sps:$4 sm:$0xff]   ;;  %599 = vmatprep.mubr.bf16.mxu0 %v1594_v33  ;;  %v1610_v44 = vld [vmem:[%s2032_s7 + $0x34] ss:$8 sps:$4 sm:$0xff]  }
  0x74   : > { %808 = vmatprep.mubr.bf16.mxu1 %v1597_v35  ;;  %v1604_v40 = vld [vmem:[%s2032_s7 + $0x24] ss:$8 sps:$4 sm:$0xff]   ;;  %v1608_v42 = vld [vmem:[%s2032_s7 + $0x20] ss:$8 sps:$4 sm:$0xff]   ;;  %v1612_v45 = vld [vmem:[%s2039_s17 + $0x34] ss:$8 sps:$4 sm:$0xff]  }
  0x75   : > { %1388 = vmatpush3.bf16.msra.mxu0 %v1574_v14  ;;  %v1606_v41 = vld [vmem:[%s2039_s17 + $0x24] ss:$8 sps:$4 sm:$0xff]   ;;  %v1609_v43 = vld [vmem:[%s2039_s17 + $0x20] ss:$8 sps:$4 sm:$0xff]   ;;  %v1614_v46 = vld [vmem:[%s2032_s7 + $0x30] ss:$8 sps:$4 sm:$0xff]  }
  0x76   : > { %1428 = vmatpush3.bf16.msra.mxu1 %v1575_v15  ;;  %1389 = vmatprep.subr.bf16.mxu0 %v1576_v16  ;;  %v1615_v47 = vld [vmem:[%s2039_s17 + $0x30] ss:$8 sps:$4 sm:$0xff]  }
  0x77   : > { %1429 = vmatprep.subr.bf16.mxu1 %v1577_v17 }
  0x79   : > { %1390 = vmatpush3.bf16.msra.mxu0 %v1578_v18 }
  0x7a   : > { %1430 = vmatpush3.bf16.msra.mxu1 %v1579_v19  ;;  %1391 = vmatprep.subr.bf16.mxu0 %v1580_v20 }
  0x7b   : > { %1431 = vmatprep.subr.bf16.mxu1 %v1581_v21 }
  0x7d   : > { %1392 = vmatpush3.bf16.msra.mxu0 %v1582_v22 }
  0x7e   : > { %1432 = vmatpush3.bf16.msra.mxu1 %v1583_v23  ;;  %1393 = vmatprep.subr.bf16.mxu0 %v1584_v24 }
  0x7f   : > { %1433 = vmatprep.subr.bf16.mxu1 %v1585_v25 }
  0x81   : > { %1394 = vmatpush3.bf16.msra.mxu0 %v1586_v26 }
  0x82   : > { %1434 = vmatpush3.bf16.msra.mxu1 %v1587_v27  ;;  %1395 = vmatprep.subr.bf16.mxu0 %v1588_v28 }
  0x83   : > { %1435 = vmatprep.subr.bf16.mxu1 %v1589_v29 }
  0x85   : > { %1396 = vmatpush3.bf16.msra.mxu0 %v1590_v30 }
  0x86   : > { %1436 = vmatpush3.bf16.msra.mxu1 %v1591_v31 }
  0x88   : > { %600 = vmatmul.mubr.bf16.vlgmr.msra.gmra.mxu0 %v1592_v32 }
  0x89   : > { %809 = vmatmul.mubr.bf16.vlgmr.msra.gmra.mxu1 %v1595_v34  ;;  %607 = vmatprep.mubr.bf16.mxu0 %v1598_v36 }
  0x8a   : > { %816 = vmatprep.mubr.bf16.mxu1 %v1600_v37 }
  0x90   : > { %608 = vmatmul.mubr.bf16.gmra.mxu0 %v1602_v38 }
  0x91   : > { %817 = vmatmul.mubr.bf16.gmra.mxu1 %v1603_v39  ;;  %615 = vmatprep.mubr.bf16.mxu0 %v1604_v40 }
  0x92   : > { %824 = vmatprep.mubr.bf16.mxu1 %v1606_v41 }
  0x98   : > { %616 = vmatmul.mubr.bf16.gmra.mxu0 %v1608_v42 }
  0x99   : > { %825 = vmatmul.mubr.bf16.gmra.mxu1 %v1609_v43  ;;  %623 = vmatprep.mubr.bf16.mxu0 %v1610_v44 }
  0x9a   : > { %832 = vmatprep.mubr.bf16.mxu1 %v1612_v45 }
  0xa0   : > { %624 = vmatmul.mubr.bf16.gmra.mxu0 %v1614_v46 }
  0xa1   : > { %833 = vmatmul.mubr.bf16.gmra.mxu1 %v1615_v47 }
 0x148   : > { %v1397_v48 = vpop.f32.mrf.mxu0 }
 0x149   : > { %v1437_v49 = vpop.f32.mrf.mxu1 }
 0x14a   : > { %v1398_v50 = vpop.f32.mrf.mxu0 }
 0x14b   : > { %v1438_v51 = vpop.f32.mrf.mxu1  ;;  %v1399_v53 = vadd.f32 %v1398_v50, %v1397_v48 }
 0x14c   : > { %v1400_v52 = vpop.f32.mrf.mxu0  ;;  %v1439_v58 = vadd.f32 %v1438_v51, %v1437_v49 }
 0x14d   : > { %v1440_v54 = vpop.f32.mrf.mxu1  ;;  %v924_v61 = vmax.f32 %v1399_v53, 0.0 }
 0x14e   : > { %v1401_v55 = vpop.f32.mrf.mxu0 }
 0x14f   : > { %v1402_v56 = vadd.f32 %v1401_v55, %v1400_v52  ;;  %v1441_v57 = vpop.f32.mrf.mxu1 }
 0x150   : > { %v1442_v59 = vadd.f32 %v1441_v57, %v1440_v54  ;;  %v1403_v60 = vpop.f32.mrf.mxu0 }
 0x151   : > { %v925_v62 = vmax.f32 %v1402_v56, 0.0  ;;  %v1443_v63 = vpop.f32.mrf.mxu1 }
 0x152   : > { %v1358_v0 = vpack.c.bf16 %v1442_v59, %v1439_v58  ;;  %v1404_v1 = vpop.f32.mrf.mxu0 }
 0x153   : > { %v1338_v2 = vpack.c.bf16 %v925_v62, %v924_v61  ;;  %v1444_v3 = vpop.f32.mrf.mxu1  ;;  %v1405_v5 = vadd.f32 %v1404_v1, %v1403_v60 }
 0x154   : > { %1359 = vst [vmem:[%s2070_s26] sm:$0xff] %v1358_v0   ;;  %v1406_v4 = vpop.f32.mrf.mxu0  ;;  %v1445_v10 = vadd.f32 %v1444_v3, %v1443_v63 }
 0x155   : > { %1339 = vst [vmem:[%s2073_s8] sm:$0xff] %v1338_v2   ;;  %v1446_v6 = vpop.f32.mrf.mxu1  ;;  %v926_v13 = vmax.f32 %v1405_v5, 0.0 }
 0x156   : > { %v1407_v7 = vpop.f32.mrf.mxu0 }
 0x157   : > { %v1408_v8 = vadd.f32 %v1407_v7, %v1406_v4  ;;  %v1447_v9 = vpop.f32.mrf.mxu1 }
 0x158   : > { %v1448_v11 = vadd.f32 %v1447_v9, %v1446_v6  ;;  %v1409_v12 = vpop.f32.mrf.mxu0 }
 0x159   : > { %v927_v14 = vmax.f32 %v1408_v8, 0.0  ;;  %v1449_v15 = vpop.f32.mrf.mxu1 }
 0x15a   : > { %v1363_v16 = vpack.c.bf16 %v1448_v11, %v1445_v10  ;;  %v1410_v17 = vpop.f32.mrf.mxu0 }
 0x15b   : > { %v1343_v18 = vpack.c.bf16 %v927_v14, %v926_v13  ;;  %v1450_v19 = vpop.f32.mrf.mxu1  ;;  %v1411_v21 = vadd.f32 %v1410_v17, %v1409_v12 }
 0x15c   : > { %1378 = vst [vmem:[%s2070_s26 + $0x8] sm:$0xff] %v1363_v16   ;;  %v1412_v20 = vpop.f32.mrf.mxu0  ;;  %v1451_v26 = vadd.f32 %v1450_v19, %v1449_v15 }
 0x15d   : > { %1375 = vst [vmem:[%s2073_s8 + $0x8] sm:$0xff] %v1343_v18   ;;  %v1452_v22 = vpop.f32.mrf.mxu1  ;;  %v928_v29 = vmax.f32 %v1411_v21, 0.0 }
 0x15e   : > { %v1413_v23 = vpop.f32.mrf.mxu0 }
 0x15f   : > { %v1414_v24 = vadd.f32 %v1413_v23, %v1412_v20  ;;  %v1453_v25 = vpop.f32.mrf.mxu1 }
 0x160   : > { %v1454_v27 = vadd.f32 %v1453_v25, %v1452_v22  ;;  %v1415_v28 = vpop.f32.mrf.mxu0 }
 0x161   : > { %v929_v30 = vmax.f32 %v1414_v24, 0.0  ;;  %v1455_v31 = vpop.f32.mrf.mxu1 }
 0x162   : > { %v1368_v32 = vpack.c.bf16 %v1454_v27, %v1451_v26  ;;  %v1416_v33 = vpop.f32.mrf.mxu0 }
 0x163   : > { %v1348_v34 = vpack.c.bf16 %v929_v30, %v928_v29  ;;  %v1456_v35 = vpop.f32.mrf.mxu1  ;;  %v1417_v37 = vadd.f32 %v1416_v33, %v1415_v28 }
 0x164   : > { %1379 = vst [vmem:[%s2070_s26 + $0x10] sm:$0xff] %v1368_v32   ;;  %v1418_v36 = vpop.f32.mrf.mxu0  ;;  %v1457_v42 = vadd.f32 %v1456_v35, %v1455_v31 }
 0x165   : > { %1376 = vst [vmem:[%s2073_s8 + $0x10] sm:$0xff] %v1348_v34   ;;  %v1458_v38 = vpop.f32.mrf.mxu1  ;;  %v930_v44 = vmax.f32 %v1417_v37, 0.0 }
 0x166   : > { %v1419_v39 = vpop.f32.mrf.mxu0 }
 0x167   : > { %v1420_v40 = vadd.f32 %v1419_v39, %v1418_v36  ;;  %v1459_v41 = vpop.f32.mrf.mxu1 }
 0x168   : > { %v1460_v43 = vadd.f32 %v1459_v41, %v1458_v38 }
 0x169   : > { %v931_v45 = vmax.f32 %v1420_v40, 0.0 }
 0x16a   : > { %v1373_v46 = vpack.c.bf16 %v1460_v43, %v1457_v42 }
 0x16b   : > { %v1353_v47 = vpack.c.bf16 %v931_v45, %v930_v44 }
 0x16c   : > { %1380 = vst [vmem:[%s2070_s26 + $0x18] sm:$0xff] %v1373_v46  }
 0x16d   : > { %1377 = vst [vmem:[%s2073_s8 + $0x18] sm:$0xff] %v1353_v47  }
 0x16e   : > { %1737 = shalt.err (!%p1734_p1)
}
 0x16f   : > { %s1738_s7 = scalar_lea.hbm %s2090_s6, 512  ;;  %s1742_s17 = scalar_lea.hbm %s2177_s5, 1024 }
 0x170   : > { %p1739_p2 = scmp.ne.s32.totalorder %s2090_s6, %s1738_s7  ;;  %p1743_p13 = scmp.lt.s32.totalorder %s2090_s6, %s2177_s5 }
 0x171   : > { %p1744_p0 = scmp.lt.s32.totalorder %s1742_s17, %s1738_s7 }
 0x172   : > { %p1740_p6 = pnand %p1739_p2, %p1981_p9 }
 0x173   : > { %p1745_p12 = por %p1744_p0, %p1743_p13 }
 0x174   : > { %p1741_p8 = pneg %p1740_p6 }
 0x176   : > { %p1746_p4 = pnand %p1745_p12, %p1741_p8 }
 0x178   : > { %1749 = shalt.err (!%p1746_p4)
}
 0x179   : > { %s1857_s8 = smov 64   ;;  %s1858_s15 = smov 4  }
 0x17a   : > { %1474 = dma.vmem_to_hbm [thread:$0]  (%p1981_p9), %s2085_s14, 512, %s2090_s6, %s1026_s25, %s1857_s8, %s1857_s8, %s1858_s15  }
 0x17b   : > { %s1021_s16 = scalar_lea.sflag [#allocation6], %s2028_s0  ;;  %s1750_s13 = scalar_lea.vmem %s2083_s9, 512 }
 0x17c   : > { %p1751_p3 = scmp.ne.s32.totalorder %s2083_s9, %s1750_s13  ;;  %s1859_s21 = smov [#allocation12]  }
 0x17d   : > { %s1754_s30 = sshll.u32 %s1859_s21, 4  ;;  %s1755_s30 = int_to_ptr.vmem [resolvable:$false] %s1754_s30 }
 0x17e   : > { %p1752_p7 = pnand %p1751_p3, %p1981_p9  ;;  %s1756_s11 = scalar_lea.vmem %s1755_s30, 1024 }
 0x17f   : > { %p1757_p5 = scmp.lt.s32.totalorder %s2083_s9, %s1755_s30  ;;  %p1758_p10 = scmp.lt.s32.totalorder %s1756_s11, %s1750_s13 }
 0x180   : > { %p1753_p11 = pneg %p1752_p7 }
 0x181   : > { %p1759_p1 = por %p1758_p10, %p1757_p5 }
 0x183   : > { %p1760_p2 = pnand %p1759_p1, %p1753_p11 }
 0x185   : > { %1763 = shalt.err (!%p1760_p2)
}
 0x186   : > { %s1764_s14 = scalar_lea.hbm %s2095_s10, 512  ;;  %s1768_s25 = scalar_lea.hbm %s2176_s4, 1024 }
 0x187   : > { %p1765_p6 = scmp.ne.s32.totalorder %s2095_s10, %s1764_s14  ;;  %p1769_p0 = scmp.lt.s32.totalorder %s2095_s10, %s2176_s4 }
 0x188   : > { %p1770_p12 = scmp.lt.s32.totalorder %s1768_s25, %s1764_s14 }
 0x189   : > { %p1766_p8 = pnand %p1765_p6, %p1981_p9 }
 0x18a   : > { %p1771_p4 = por %p1770_p12, %p1769_p0 }
 0x18b   : > { %p1767_p13 = pneg %p1766_p8 }
 0x18d   : > { %p1772_p3 = pnand %p1771_p4, %p1767_p13 }
 0x18f   : > { %1775 = shalt.err (!%p1772_p3)
}
 0x190   : > { %1473 = dma.vmem_to_hbm [thread:$0]  (%p1981_p9), %s2083_s9, 512, %s2095_s10, %s1021_s16, %s1857_s8, %s1857_s8, %s1858_s15  }
 0x191 PF: > { %s1070_s3 = sand.u32 1, %s1826_s18   ;;  %p2201_p7 = scmp.ne.s32.totalorder %s2186_s27, 0 }
 0x192   : > { %p2202_p11 = scmp.ge.s32.totalorder %s1846_s23, 2  ;;  %s1071_s7 = scalar_lea.sflag [#allocation6], %s1070_s3 }
 0x194   : > { %p1492_p5 = pnand %p2202_p11, %p2201_p7 }
 0x196   : > { %p1493_p10 = pneg %p1492_p5 }
 0x198   : > { %1817 = dma.done.wait (%p1493_p10), %s1071_s7, 512  }
 0x199   : > { %1819 = vsyncadd (%p1493_p10), %s1071_s7, 4294966784  ;;  %s1080_s20 = scalar_lea.sflag [#allocation14], %s1070_s3 }
 0x19a   : > { %1821 = dma.done.wait (%p1493_p10), %s1080_s20, 512  }
 0x19b   : > { %1823 = vsyncadd (%p1493_p10), %s1080_s20, 4294966784  ;;  %s29_s23 = sadd.s32 1, %s1846_s23   ;;  %s2203_s29 = sld [smem:[#allocation21_spill]] }
 0x19c   : > { %p26_p1 = scmp.ge.s32.totalorder %s29_s23, 4   ;;  %s2204_s20 = sld [smem:[#allocation23_spill]] }
 0x19d   : > { %s2205_s9 = sld [smem:[#allocation22_spill]]  ;;  %s2206_s18 = smov %s1830_s19 }
 0x19e   : > { %s2208_s21 = smov %s1842_s22 }
 0x19f   :  { %28 = sbr.rel (!%p26_p1) target bundleno = 15 (0xf), region = 133 }
 0x1a1   : > { %s2207_s19 = smov %s2203_s29 }
 0x1a3   : > { %s2209_s22 = smov %s2205_s9 }
 0x1a4   :  { %1085 = vsyncpa [#allocation5], 1 }
 0x1a5   :  { %1087 = vsyncpa [#allocation5 + $0x1], 1 }
 0x1a6   :  { %1088 = vsyncpa [#allocation8], 1 }
 0x1a7   :  { %1090 = vsyncpa [#allocation8 + $0x1], 1 }
 0x1a8   :  { %1091 = vsyncpa [#allocation11], 1 }
 0x1a9   :  { %1092 = vsyncpa [#allocation6], 1 }
 0x1aa   :  { %1094 = vsyncpa [#allocation6 + $0x1], 1 }
 0x1ab   :  { %1095 = vsyncpa [#allocation14], 1 }
 0x1ac   :  { %1097 = vsyncpa [#allocation14 + $0x1], 1 }

</bundles_post_ra>
